<compile_context>
chip_gen: v6e
topology: v6e:2x2x1
jax: 0.10.0
libtpu: 0.0.40
codegen_flags: <defaults>
</compile_context>

<pallas_src>
import functools

import jax
import jax.numpy as jnp
import numpy as np
from jax.experimental import pallas as pl
from jax.experimental.pallas import tpu as pltpu


def _round_up(x, m):
    return ((x + m - 1) // m) * m


def _chip_info():
    """Best-effort, generation-aware hardware query with safe fallbacks."""
    kind = ""
    try:
        kind = jax.devices()[0].device_kind.lower()
    except Exception:
        pass
    pre_v6 = any(t in kind for t in ("v2", "v3", "v4", "v5"))
    # Chips with 2 TensorCores sharing a chip (megacore): v4, v5p, v7x.
    two_tc = any(t in kind for t in ("v4", "v5p", "7x", "v7"))
    vmem_cap = None
    try:
        vmem_cap = int(getattr(pltpu.get_tpu_info(), "vmem_capacity_bytes"))
    except Exception:
        vmem_cap = None
    if vmem_cap is None or vmem_cap <= 0:
        # Conservative default (v7x-sized) if the query fails and the chip is
        # unknown or looks like a v7x; otherwise assume the 128-MiB parts.
        vmem_cap = (64 if (not kind or "7" in kind) else 128) * 1024 * 1024
    return kind, pre_v6, two_tc, vmem_cap


def mmlp_kernel(x_ref, w1_ref, b1_ref, w2_ref, b2_ref, o_ref, *, tanh_bf16):
    ki = pl.program_id(1)

    # Output block index is constant across ki -> o_ref stays VMEM-resident
    # and doubles as the f32 accumulator.
    @pl.when(ki == 0)
    def _():
        o_ref[...] = jnp.zeros_like(o_ref)

    # Wide hidden layer for this K-slice of the fused ensemble.
    pre = (
        jnp.dot(x_ref[...], w1_ref[...], preferred_element_type=jnp.float32)
        + b1_ref[...]
    )
    if tanh_bf16:
        # bf16 EUP path (v6e/v7x): halves the hidden intermediate and removes
        # the separate cast before the second matmul.
        h = jnp.tanh(pre.astype(jnp.bfloat16))
    else:
        h = jnp.tanh(pre).astype(w2_ref.dtype)

    # Second matmul contracts over the fused (model * hidden) dimension,
    # performing the ensemble sum for free. 1/M is already folded into W2.
    o_ref[...] += jnp.dot(h, w2_ref[...], preferred_element_type=jnp.float32)

    @pl.when(ki == pl.num_programs(1) - 1)
    def _():
        o_ref[...] += b2_ref[...]  # pre-averaged output bias


def basic_mmlp(
    x,
    w1,
    b1,
    w2,
    b2,
    *,
    weight_dtype=jnp.bfloat16,
    b_tile=None,
    k_tile=None,
):
    """mean_m( tanh(x @ W1[m] + b1[m]) @ W2[m] + b2[m] ) via a fused Pallas kernel."""
    M, d_in, hidden = w1.shape
    _, _, d_out = w2.shape
    B = x.shape[0]
    K = M * hidden
    inv_m = 1.0 / float(M)

    kind, pre_v6, two_tc, vmem_cap = _chip_info()
    k_align = 128 if pre_v6 else 256            # 2x256 MXU cadence on v6e/v7x
    w_bytes = jnp.dtype(weight_dtype).itemsize
    tanh_bf16 = (weight_dtype == jnp.bfloat16) and (not pre_v6) and bool(kind)

    # Generation-aware VMEM budget: ~3/4 of physical (96 MiB on 128-MiB parts,
    # 48 MiB on v7x), with a small margin reserved for internal scratch.
    vmem_limit_bytes = min((vmem_cap * 3) // 4, 100 * 1024 * 1024)
    tile_budget = vmem_limit_bytes - 4 * 1024 * 1024

    # ---- Fuse the ensemble into wide weight matrices (host side, f32). ----
    w1_wide = jnp.transpose(w1, (1, 0, 2)).reshape(d_in, K)   # [D_in, M*H]
    b1_wide = b1.reshape(1, K).astype(jnp.float32)            # [1, M*H]
    # Fold the 1/M ensemble mean into the second layer (in f32, before cast).
    w2_stack = (w2.reshape(K, d_out).astype(jnp.float32)) * inv_m
    b2_mean = (b2.sum(axis=0) * inv_m).reshape(1, d_out).astype(jnp.float32)

    # ---- Lane-dense, full-width MXU feeds: zero-pad d_in and d_out. ----
    # (Exact: zero rows of W1 / zero columns of W2 contribute nothing.)
    if pre_v6 or d_in <= 128:
        d_in_pad = _round_up(d_in, 128)
    else:
        d_in_pad = _round_up(d_in, 256)
    d_out_pad = _round_up(d_out, 128)
    if d_in_pad != d_in:
        x = jnp.pad(x, ((0, 0), (0, d_in_pad - d_in)))
        w1_wide = jnp.pad(w1_wide, ((0, d_in_pad - d_in), (0, 0)))
    if d_out_pad != d_out:
        w2_stack = jnp.pad(w2_stack, ((0, 0), (0, d_out_pad - d_out)))
        b2_mean = jnp.pad(b2_mean, ((0, 0), (0, d_out_pad - d_out)))

    # ---- Batch tiling: >= 2 grid points on 2-TC chips, <= ~1024 rows/tile. ----
    B_round = _round_up(B, 8)
    if b_tile is None:
        n_b = max(2 if two_tc else 1, pl.cdiv(B_round, 1024))
        if two_tc:
            n_b = _round_up(n_b, 2)
        b_tile = _round_up(pl.cdiv(B_round, n_b), 8)
    else:
        b_tile = _round_up(min(b_tile, B_round), 8)

    # ---- VMEM accounting for one grid step (everything that must coexist). ----
    def _tile_bytes(bt, kt):
        x_b = 2 * bt * d_in_pad * w_bytes          # double-buffered x tile
        w1_b = 2 * d_in_pad * kt * w_bytes         # double-buffered W1 K-slice
        b1_b = 2 * kt * 4                          # double-buffered b1 K-slice
        w2_b = 2 * kt * d_out_pad * w_bytes        # double-buffered W2 K-slice
        b2_b = 2 * d_out_pad * 4
        out_b = 2 * bt * d_out_pad * 4             # f32 output block / accumulator
        h_b = 6 * bt * kt                          # f32 matmul result + bf16 tanh copy
        return x_b + w1_b + b1_b + w2_b + b2_b + out_b + h_b

    K_aligned = _round_up(K, k_align)
    if k_tile is None:
        # Pass 1: keep the whole fused ensemble resident (n_k == 1) so weights
        # are streamed from HBM exactly once; shrink b_tile first if needed.
        bt = b_tile
        while bt > 8 and _tile_bytes(bt, K_aligned) > tile_budget:
            bt = max(8, _round_up(bt // 2, 8))
        if _tile_bytes(bt, K_aligned) <= tile_budget:
            b_tile, k_tile = bt, K_aligned
        else:
            # Pass 2: tile the fused K dimension. Weights then get re-streamed
            # per batch tile, so keep b_tile as large as the budget allows.
            bt = b_tile
            while True:
                fixed = (2 * bt * d_in_pad * w_bytes + 2 * d_out_pad * 4
                         + 2 * bt * d_out_pad * 4)
                per_k = (2 * d_in_pad * w_bytes + 2 * 4
                         + 2 * d_out_pad * w_bytes + 6 * bt)
                kt = max(0, tile_budget - fixed) // per_k
                kt = (kt // k_align) * k_align
                if kt >= k_align:
                    b_tile, k_tile = bt, int(min(kt, K_aligned))
                    break
                if bt > 8:
                    bt = max(8, _round_up(bt // 2, 8))
                else:
                    b_tile, k_tile = 8, k_align     # last resort
                    break
    else:
        k_tile = _round_up(min(k_tile, K_aligned), 128)

    n_k = pl.cdiv(K, k_tile)
    K_pad = n_k * k_tile
    n_b = pl.cdiv(B_round, b_tile)
    B_pad = n_b * b_tile

    # ---- Zero-pad the fused K dimension and the batch (exact). ----
    if K_pad != K:
        w1_wide = jnp.pad(w1_wide, ((0, 0), (0, K_pad - K)))
        b1_wide = jnp.pad(b1_wide, ((0, 0), (0, K_pad - K)))
        w2_stack = jnp.pad(w2_stack, ((0, K_pad - K), (0, 0)))
    x_c = x
    if B_pad != B:
        x_c = jnp.pad(x_c, ((0, B_pad - B), (0, 0)))

    # ---- bf16 streaming of x / W1 / W2 (f32 accumulation in-kernel). ----
    # TODO(synk): an fp8 (v7x) / int8 (v6e) weight-streaming mode would halve
    # weight HBM bytes but needs accuracy validation; not enabled here.
    x_c = x_c.astype(weight_dtype)
    w1_wide = w1_wide.astype(weight_dtype)
    w2_stack = w2_stack.astype(weight_dtype)

    out_padded = pl.pallas_call(
        functools.partial(mmlp_kernel, tanh_bf16=tanh_bf16),
        out_shape=jax.ShapeDtypeStruct((B_pad, d_out_pad), jnp.float32),
        grid_spec=pltpu.PrefetchScalarGridSpec(
            num_scalar_prefetch=0,
            grid=(n_b, n_k),
            in_specs=[
                pl.BlockSpec((b_tile, d_in_pad), lambda bi, ki: (bi, 0)),    # x tile
                pl.BlockSpec((d_in_pad, k_tile), lambda bi, ki: (0, ki)),    # W1 K-slice
                pl.BlockSpec((1, k_tile), lambda bi, ki: (0, ki)),           # b1 K-slice
                pl.BlockSpec((k_tile, d_out_pad), lambda bi, ki: (ki, 0)),   # W2 K-slice
                pl.BlockSpec((1, d_out_pad), lambda bi, ki: (0, 0)),         # mean b2
            ],
            out_specs=pl.BlockSpec((b_tile, d_out_pad), lambda bi, ki: (bi, 0)),
        ),
        compiler_params=pltpu.CompilerParams(
            dimension_semantics=("parallel", "arbitrary"),  # batch parallel, K reduction
            vmem_limit_bytes=vmem_limit_bytes,
        ),
    )(x_c, w1_wide, b1_wide, w2_stack, b2_mean)

    return out_padded[:B, :d_out]


def ref_mmlp(x, w1, b1, w2, b2):
    """Pure-JAX f32 reference matching BasicMMLP.forward semantics."""
    outs = [jnp.tanh(x @ w1[m] + b1[m]) @ w2[m] + b2[m] for m in range(w1.shape[0])]
    return sum(outs) / len(outs)


if __name__ == "__main__":
    # Small deterministic setup.
    B, D_IN, HIDDEN, D_OUT, M = 8, 32, 64, 16, 3

    key = jax.random.PRNGKey(0)
    kx, kw1, kb1, kw2, kb2 = jax.random.split(key, 5)

    x = jax.random.normal(kx, (B, D_IN), dtype=jnp.float32)

    # PyTorch Linear-style init: uniform(-1/sqrt(fan_in), 1/sqrt(fan_in)).
    bound1 = 1.0 / np.sqrt(D_IN)
    bound2 = 1.0 / np.sqrt(HIDDEN)
    w1 = jax.random.uniform(kw1, (M, D_IN, HIDDEN), jnp.float32, -bound1, bound1)
    b1 = jax.random.uniform(kb1, (M, HIDDEN), jnp.float32, -bound1, bound1)
    w2 = jax.random.uniform(kw2, (M, HIDDEN, D_OUT), jnp.float32, -bound2, bound2)
    b2 = jax.random.uniform(kb2, (M, D_OUT), jnp.float32, -bound2, bound2)

    expected = np.asarray(ref_mmlp(x, w1, b1, w2, b2))

    # Default path: whole fused ensemble resident (n_k == 1), weights streamed once.
    out = jax.block_until_ready(basic_mmlp(x, w1, b1, w2, b2))
    np.testing.assert_allclose(np.asarray(out), expected, rtol=2e-2, atol=2e-2)

    # Forced K tiling: exercises the accumulate-over-fused-K pipeline
    # (K = 192 padded to 256, two K steps).
    out_tiled = jax.block_until_ready(basic_mmlp(x, w1, b1, w2, b2, k_tile=128))
    np.testing.assert_allclose(np.asarray(out_tiled), expected, rtol=2e-2, atol=2e-2)

    print("KERNEL_OK")
</pallas_src>

<mosaic_0001>
module attributes {stable_mosaic.version = 11 : i64} {
  func.func @mmlp_kernel(%arg0: i32, %arg1: i32, %arg2: memref<8x128xbf16, #tpu.memory_space<vmem>>, %arg3: memref<128x256xbf16, #tpu.memory_space<vmem>>, %arg4: memref<1x256xf32, #tpu.memory_space<vmem>>, %arg5: memref<256x128xbf16, #tpu.memory_space<vmem>>, %arg6: memref<1x128xf32, #tpu.memory_space<vmem>>, %arg7: memref<8x128xf32, #tpu.memory_space<vmem>>) attributes {dimension_semantics = [#tpu.dimension_semantics<parallel>, #tpu.dimension_semantics<arbitrary>], iteration_bounds = array<i64: 1, 1>, scalar_prefetch = 0 : i64, scratch_operands = 0 : i64, tpu.core_type = #tpu.core_type<tc>, window_params = [{transform_indices = @transform_0, window_bounds = array<i64: 8, 128>}, {transform_indices = @transform_1, window_bounds = array<i64: 128, 256>}, {transform_indices = @transform_2, window_bounds = array<i64: 1, 256>}, {transform_indices = @transform_3, window_bounds = array<i64: 256, 128>}, {pipeline_mode = #tpu.pipeline_mode<synchronous>, transform_indices = @transform_4, window_bounds = array<i64: 1, 128>}, {transform_indices = @transform_5, window_bounds = array<i64: 8, 128>}]} {
    %c0_i32 = arith.constant 0 : i32
    %0 = arith.cmpi eq, %arg1, %c0_i32 : i32
    %1 = arith.extui %0 : i1 to i32
    %c0_i32_0 = arith.constant 0 : i32
    %2 = arith.cmpi ne, %1, %c0_i32_0 : i32
    scf.if %2 {
      %cst_15 = arith.constant 0.000000e+00 : f32
      %19 = vector.broadcast %cst_15 : f32 to vector<8x128xf32>
      %c0_16 = arith.constant 0 : index
      %c0_17 = arith.constant 0 : index
      %20 = vector.load %arg7[%c0_16, %c0_17] : memref<8x128xf32, #tpu.memory_space<vmem>>, vector<8x128xf32>
      tpu.vector_store %arg7[%c0_16, %c0_17], %19 {strides = array<i32>} : memref<8x128xf32, #tpu.memory_space<vmem>>, vector<8x128xf32>,
    } else {
    }
    %c0 = arith.constant 0 : index
    %c0_1 = arith.constant 0 : index
    %3 = vector.load %arg2[%c0, %c0_1] : memref<8x128xbf16, #tpu.memory_space<vmem>>, vector<8x128xbf16>
    %c0_2 = arith.constant 0 : index
    %c0_3 = arith.constant 0 : index
    %4 = vector.load %arg3[%c0_2, %c0_3] : memref<128x256xbf16, #tpu.memory_space<vmem>>, vector<128x256xbf16>
    %cst = arith.constant dense<0.000000e+00> : vector<8x256xf32>
    %5 = tpu.matmul %3, %4, %cst {dimension_numbers = #tpu.dot_dimension_numbers<[1], [0], [0], [1], [0, 0, 1, 1], [], []>} : vector<8x128xbf16>, vector<128x256xbf16>, vector<8x256xf32> -> vector<8x256xf32>
    %c0_4 = arith.constant 0 : index
    %c0_5 = arith.constant 0 : index
    %6 = vector.load %arg4[%c0_4, %c0_5] : memref<1x256xf32, #tpu.memory_space<vmem>>, vector<1x256xf32>
    %7 = vector.broadcast %6 : vector<1x256xf32> to vector<8x256xf32>
    %8 = arith.addf %5, %7 : vector<8x256xf32>
    %9 = arith.truncf %8 : vector<8x256xf32> to vector<8x256xbf16>
    %10 = math.tanh %9 : vector<8x256xbf16>
    %c0_6 = arith.constant 0 : index
    %c0_7 = arith.constant 0 : index
    %11 = vector.load %arg7[%c0_6, %c0_7] : memref<8x128xf32, #tpu.memory_space<vmem>>, vector<8x128xf32>
    %c0_8 = arith.constant 0 : index
    %c0_9 = arith.constant 0 : index
    %12 = vector.load %arg5[%c0_8, %c0_9] : memref<256x128xbf16, #tpu.memory_space<vmem>>, vector<256x128xbf16>
    %cst_10 = arith.constant dense<0.000000e+00> : vector<8x128xf32>
    %13 = tpu.matmul %10, %12, %cst_10 {dimension_numbers = #tpu.dot_dimension_numbers<[1], [0], [0], [1], [0, 0, 1, 1], [], []>} : vector<8x256xbf16>, vector<256x128xbf16>, vector<8x128xf32> -> vector<8x128xf32>
    %14 = arith.addf %11, %13 : vector<8x128xf32>
    %c0_11 = arith.constant 0 : index
    %c0_12 = arith.constant 0 : index
    %15 = vector.load %arg7[%c0_11, %c0_12] : memref<8x128xf32, #tpu.memory_space<vmem>>, vector<8x128xf32>
    tpu.vector_store %arg7[%c0_11, %c0_12], %14 {strides = array<i32>} : memref<8x128xf32, #tpu.memory_space<vmem>>, vector<8x128xf32>,
    %c0_i32_13 = arith.constant 0 : i32
    %16 = arith.cmpi eq, %arg1, %c0_i32_13 : i32
    %17 = arith.extui %16 : i1 to i32
    %c0_i32_14 = arith.constant 0 : i32
    %18 = arith.cmpi ne, %17, %c0_i32_14 : i32
    scf.if %18 {
      %c0_15 = arith.constant 0 : index
      %c0_16 = arith.constant 0 : index
      %19 = vector.load %arg7[%c0_15, %c0_16] : memref<8x128xf32, #tpu.memory_space<vmem>>, vector<8x128xf32>
      %c0_17 = arith.constant 0 : index
      %c0_18 = arith.constant 0 : index
      %20 = vector.load %arg6[%c0_17, %c0_18] : memref<1x128xf32, #tpu.memory_space<vmem>>, vector<1x128xf32>
      %21 = vector.broadcast %20 : vector<1x128xf32> to vector<8x128xf32>
      %22 = arith.addf %19, %21 : vector<8x128xf32>
      %c0_19 = arith.constant 0 : index
      %c0_20 = arith.constant 0 : index
      %23 = vector.load %arg7[%c0_19, %c0_20] : memref<8x128xf32, #tpu.memory_space<vmem>>, vector<8x128xf32>
      tpu.vector_store %arg7[%c0_19, %c0_20], %22 {strides = array<i32>} : memref<8x128xf32, #tpu.memory_space<vmem>>, vector<8x128xf32>,
    } else {
    }
    return
  }
  func.func @transform_0(%arg0: i32, %arg1: i32) -> (i32, i32) {
    %c0_i32 = arith.constant 0 : i32
    %c0_i32_0 = arith.constant 0 : i32
    return %arg0, %c0_i32 : i32, i32
  }
  func.func @transform_1(%arg0: i32, %arg1: i32) -> (i32, i32) {
    %c0_i32 = arith.constant 0 : i32
    %c0_i32_0 = arith.constant 0 : i32
    return %c0_i32, %arg1 : i32, i32
  }
  func.func @transform_2(%arg0: i32, %arg1: i32) -> (i32, i32) {
    %c0_i32 = arith.constant 0 : i32
    %c0_i32_0 = arith.constant 0 : i32
    return %c0_i32, %arg1 : i32, i32
  }
  func.func @transform_3(%arg0: i32, %arg1: i32) -> (i32, i32) {
    %c0_i32 = arith.constant 0 : i32
    %c0_i32_0 = arith.constant 0 : i32
    return %arg1, %c0_i32 : i32, i32
  }
  func.func @transform_4(%arg0: i32, %arg1: i32) -> (i32, i32) {
    %c0_i32 = arith.constant 0 : i32
    %c0_i32_0 = arith.constant 0 : i32
    %c0_i32_1 = arith.constant 0 : i32
    return %c0_i32, %c0_i32_0 : i32, i32
  }
  func.func @transform_5(%arg0: i32, %arg1: i32) -> (i32, i32) {
    %c0_i32 = arith.constant 0 : i32
    %c0_i32_0 = arith.constant 0 : i32
    return %arg0, %c0_i32 : i32, i32
  }
}

</mosaic_0001>

<bundles_post_ra>
// kernel: tpu_custom_call.1
= control target key start
LH: loop header
LB: loop body
LE: loop exit
PB: predicated region body
PF: predicated region fallthrough
CT: control target
= control target key end

     0   :  { %10 = vsyncpa [#allocation3], 0  ;;  %s672_s0 = inlined_call_operand.hbm [shape: bf16[8,128], index: 0, kind: input, shape index: {}]   ;;  %s673_s1 = inlined_call_operand.hbm [shape: bf16[128,256], index: 1, kind: input, shape index: {}]   ;;  %s674_s2 = inlined_call_operand.vmem [shape: f32[1,256], index: 2, kind: input, shape index: {}]   ;;  %s675_s3 = inlined_call_operand.hbm [shape: bf16[256,128], index: 3, kind: input, shape index: {}]   ;;  %s676_s4 = inlined_call_operand.vmem [shape: f32[1,128], index: 4, kind: input, shape index: {}]   ;;  %s677_s5 = inlined_call_operand.hbm [shape: f32[8,128], index: 5, kind: output, shape index: {}]  }
   0x1   :  { %11 = vsyncpa [#allocation6], 0 }
   0x2   :  { %12 = vsyncpa [#allocation4], 0  ;;  %s615_s18 = smov [#allocation5]  }
   0x3   :  { %s28_s19 = sshll.u32 %s615_s18, 4  ;;  %s29_s19 = int_to_ptr.vmem [resolvable:$true] %s28_s19 }
   0x4   :  { %s537_s20 = scalar_lea.vmem %s29_s19, 2048  ;;  %p542_p1 = scmp.lt.s32.totalorder %s29_s19, %s29_s19 }
   0x5   :  { %p538_p0 = scmp.ne.s32.totalorder %s29_s19, %s537_s20  ;;  %p543_p2 = scmp.lt.s32.totalorder %s537_s20, %s537_s20 }
   0x7   :  { %p544_p3 = por %p543_p2, %p542_p1 }
   0x9   :  { %p545_p4 = pnand %p544_p3, %p538_p0 }
   0xb   :  { %548 = shalt.err (!%p545_p4)
}
   0xc   :  { %s616_s21 = smov 128   ;;  %s617_s22 = smov 8  }
   0xd   :  { %34 = dma.hbm_to_vmem [thread:$0]  %s673_s1, 2048, %s29_s19, [#allocation6], %s616_s21, %s616_s21, %s617_s22  }
   0xe   :  { %s618_s25 = smov [#allocation2]   ;;  %s619_s27 = smov [#allocation7]  }
   0xf   :  { %s19_s26 = sshll.u32 %s618_s25, 4  ;;  %s42_s28 = sshll.u32 %s619_s27, 4  ;;  %s20_s26 = int_to_ptr.vmem [resolvable:$true] %s19_s26  ;;  %s43_s28 = int_to_ptr.vmem [resolvable:$true] %s42_s28 }
  0x10   :  { %s557_s29 = scalar_lea.vmem %s20_s26, 64  ;;  %p562_p6 = scmp.lt.s32.totalorder %s20_s26, %s20_s26 }
  0x11   :  { %p558_p5 = scmp.ne.s32.totalorder %s20_s26, %s557_s29  ;;  %p563_p7 = scmp.lt.s32.totalorder %s557_s29, %s557_s29 }
  0x13   :  { %p564_p8 = por %p563_p7, %p562_p6 }
  0x15   :  { %p565_p9 = pnand %p564_p8, %p558_p5 }
  0x17   :  { %568 = shalt.err (!%p565_p9)
}
  0x18   :  { %22 = dma.hbm_to_vmem [thread:$0]  %s672_s0, 64, %s20_s26, [#allocation3]  }
  0x19   :  { %s577_s7 = scalar_lea.vmem %s43_s28, 2048  ;;  %p582_p11 = scmp.lt.s32.totalorder %s43_s28, %s43_s28 }
  0x1a   :  { %p578_p10 = scmp.ne.s32.totalorder %s43_s28, %s577_s7  ;;  %p583_p12 = scmp.lt.s32.totalorder %s577_s7, %s577_s7 }
  0x1c   :  { %p584_p13 = por %p583_p12, %p582_p11 }
  0x1e   :  { %p585_p0 = pnand %p584_p13, %p578_p10 }
  0x20   :  { %588 = shalt.err (!%p585_p0)
}
  0x21   :  { %s620_s1 = smov 64   ;;  %s621_s8 = smov 4  }
  0x22   :  { %48 = dma.hbm_to_vmem [thread:$0]  %s675_s3, 2048, %s43_s28, [#allocation6], %s620_s1, %s620_s1, %s621_s8  }
  0x23   :  { %609 = dma.done.wait [#allocation3], 64  }
  0x24   :  { %610 = vsyncadd [#allocation3], 4294967232 }
  0x25   :  { %611 = dma.done.wait [#allocation6], 4096  }
  0x26   :  { %612 = vsyncadd [#allocation6], 4294963200  ;;  %v622_v0 = vmov 0   ;;  %v485_v1 = vld [vmem:[#allocation5 + $0x74] ss:$8 sps:$4 sm:$0xff]   ;;  %v513_v15 = vld [vmem:[#allocation7 + $0x68] sm:$0xff]   ;;  %v85_v34 = vlaneseq }
  0x27   :  { %207 = vmatprep.mubr.bf16.mxu0 %v622_v0  ;;  %v487_v2 = vld [vmem:[#allocation5 + $0x70] ss:$8 sps:$4 sm:$0xff]   ;;  %175 = vmatprep.subr.bf16.mxu0 %v485_v1  ;;  %v488_v3 = vld [vmem:[#allocation5 + $0x64] ss:$8 sps:$4 sm:$0xff]   ;;  %v490_v4 = vld [vmem:[#allocation5 + $0x60] ss:$8 sps:$4 sm:$0xff]  }
  0x28   :  { %176 = vmatpush1.bf16.msra.mxu0 %v487_v2  ;;  %v491_v5 = vld [vmem:[#allocation5 + $0x54] ss:$8 sps:$4 sm:$0xff]   ;;  %v493_v6 = vld [vmem:[#allocation5 + $0x50] ss:$8 sps:$4 sm:$0xff]   ;;  %v494_v7 = vld [vmem:[#allocation5 + $0x44] ss:$8 sps:$4 sm:$0xff]  }
  0x29   :  { %177 = vmatprep.subr.bf16.mxu0 %v488_v3  ;;  %v496_v8 = vld [vmem:[#allocation5 + $0x40] ss:$8 sps:$4 sm:$0xff]   ;;  %v497_v9 = vld [vmem:[#allocation5 + $0x34] ss:$8 sps:$4 sm:$0xff]   ;;  %v499_v12 = vld [vmem:[#allocation5 + $0x30] ss:$8 sps:$4 sm:$0xff]  }
  0x2a   :  { %v509_v10 = vld [vmem:[#allocation7 + $0x78] sm:$0xff]   ;;  %v511_v13 = vld [vmem:[#allocation7 + $0x70] sm:$0xff]   ;;  %v500_v16 = vld [vmem:[#allocation5 + $0x24] ss:$8 sps:$4 sm:$0xff]   ;;  %v86_v35 = vshrl.u32 %v85_v34, 7  ;;  %s623_s12 = smov [#allocation8]  }
  0x2b   :  { %v510_v11 = vld [vmem:[#allocation7 + $0x38] sm:$0xff]   ;;  %453 = vmatprep.subr.bf16.mxu1 %v509_v10  ;;  %v512_v14 = vld [vmem:[#allocation7 + $0x30] sm:$0xff]   ;;  %v502_v17 = vld [vmem:[#allocation5 + $0x20] ss:$8 sps:$4 sm:$0xff]   ;;  %s410_s13 = sshll.u32 %s623_s12, 4  ;;  %s411_s13 = int_to_ptr.vmem [resolvable:$true] %s410_s13 }
  0x2c   :  { %178 = vmatpush1.bf16.msra.mxu0 %v490_v4  ;;  %454 = vmatpush3.bf16.msra.mxu1 %v510_v11  ;;  %v503_v18 = vld [vmem:[#allocation5 + $0x14] ss:$8 sps:$4 sm:$0xff]   ;;  %v505_v19 = vld [vmem:[#allocation5 + $0x10] ss:$8 sps:$4 sm:$0xff]   ;;  %v506_v20 = vld [vmem:[#allocation5 + $0x4] ss:$8 sps:$4 sm:$0xff]   ;;  %p594_p2 = scmp.lt.s32.totalorder %s411_s13, %s411_s13 }
  0x2d   :  { %179 = vmatprep.subr.bf16.mxu0 %v491_v5  ;;  %455 = vmatprep.subr.bf16.mxu1 %v511_v13  ;;  %v508_v21 = vld [vmem:[#allocation5] ss:$8 sps:$4 sm:$0xff]   ;;  %v66_v22 = vld [vmem:[#allocation2] sm:$0xf]  ;;  %v519_v28 = vld [vmem:[#allocation7 + $0x50] sm:$0xff]   ;;  %v87_v36 = vsub.s32 0, %v86_v35 }
  0x2e   :  { %v514_v23 = vld [vmem:[#allocation7 + $0x28] sm:$0xff]   ;;  %v515_v24 = vld [vmem:[#allocation7 + $0x60] sm:$0xff]   ;;  %v517_v26 = vld [vmem:[#allocation7 + $0x58] sm:$0xff]   ;;  %v91_v38 = vsub.s32 1, %v86_v35  ;;  %s589_s14 = scalar_lea.vmem %s411_s13, 128 }
  0x2f   :  { %v516_v25 = vld [vmem:[#allocation7 + $0x20] sm:$0xff]   ;;  %v518_v27 = vld [vmem:[#allocation7 + $0x18] sm:$0xff]   ;;  %v520_v29 = vld [vmem:[#allocation7 + $0x10] sm:$0xff]   ;;  %p590_p1 = scmp.ne.s32.totalorder %s411_s13, %s589_s14  ;;  %p595_p3 = scmp.lt.s32.totalorder %s589_s14, %s589_s14 }
  0x30   :  { %180 = vmatpush1.bf16.msra.mxu0 %v493_v6  ;;  %456 = vmatpush3.bf16.msra.mxu1 %v512_v14  ;;  %v521_v30 = vld [vmem:[#allocation7 + $0x48] sm:$0xff]   ;;  %v523_v32 = vld [vmem:[#allocation7 + $0x40] sm:$0xff]   ;;  %v83_v37 = vld [vmem:[%s674_s2] sm:$0x3] }
  0x31   :  { %181 = vmatprep.subr.bf16.mxu0 %v494_v7  ;;  %457 = vmatprep.subr.bf16.mxu1 %v513_v15  ;;  %v522_v31 = vld [vmem:[#allocation7 + $0x8] sm:$0xff]   ;;  %v524_v33 = vld [vmem:[#allocation7] sm:$0xff]   ;;  %v88_v39 = vrot.slane %v83_v37, %v87_v36  ;;  %v92_v40 = vrot.slane %v83_v37, %v91_v38  ;;  %v452_v55 = vld [vmem:[%s676_s4] ss:$0 sm:$0xff]  ;;  %p596_p4 = por %p595_p3, %p594_p2 }
  0x33   :  { %p597_p5 = pnand %p596_p4, %p590_p1 }
  0x34   :  { %182 = vmatpush1.bf16.msra.mxu0 %v496_v8  ;;  %458 = vmatpush3.bf16.msra.mxu1 %v514_v23 }
  0x35   :  { %183 = vmatprep.subr.bf16.mxu0 %v497_v9  ;;  %459 = vmatprep.subr.bf16.mxu1 %v515_v24 }
  0x38   :  { %184 = vmatpush1.bf16.msra.mxu0 %v499_v12  ;;  %460 = vmatpush3.bf16.msra.mxu1 %v516_v25 }
  0x39   :  { %185 = vmatprep.subr.bf16.mxu0 %v500_v16  ;;  %461 = vmatprep.subr.bf16.mxu1 %v517_v26 }
  0x3c   :  { %186 = vmatpush1.bf16.msra.mxu0 %v502_v17  ;;  %462 = vmatpush3.bf16.msra.mxu1 %v518_v27 }
  0x3d   :  { %187 = vmatprep.subr.bf16.mxu0 %v503_v18  ;;  %463 = vmatprep.subr.bf16.mxu1 %v519_v28 }
  0x40   :  { %188 = vmatpush1.bf16.msra.mxu0 %v505_v19  ;;  %464 = vmatpush3.bf16.msra.mxu1 %v520_v29 }
  0x41   :  { %189 = vmatprep.subr.bf16.mxu0 %v506_v20  ;;  %465 = vmatprep.subr.bf16.mxu1 %v521_v30 }
  0x44   :  { %190 = vmatpush1.bf16.msra.mxu0 %v508_v21  ;;  %466 = vmatpush3.bf16.msra.mxu1 %v522_v31 }
  0x45   :  { %467 = vmatprep.subr.bf16.mxu1 %v523_v32 }
  0x47   :  { %208 = vmatmul.mubr.bf16.vlgmr.msra.gmra.mxu0 %v66_v22 }
  0x48   :  { %468 = vmatpush3.bf16.msra.mxu1 %v524_v33 }
 0x107   :  { %v209_v41 = vpop.f32.mrf.mxu0 }
 0x108   :  { %v210_v42 = vadd.f32 %v209_v41, %v88_v39 }
 0x109   :  { %v211_v43 = vpop.f32.mrf.mxu0 }
 0x10a   :  { %v212_v44 = vadd.f32 %v211_v43, %v92_v40  ;;  %v216_v45 = vpack.c.bf16 %v210_v42, %v210_v42 }
 0x10b   :  { %v213_v46 = vpop.f32.mrf.mxu0 }
 0x10c   :  { %v217_v47 = vpack.c.bf16 %v212_v44, %v212_v44 }
 0x10d   :  { %v214_v48 = vpop.f32.mrf.mxu0 }
 0x10e   :  { %525 = vtanh.bf16 %v217_v47 }
 0x10f   :  { %527 = vtanh.bf16 %v216_v45 }
 0x11c   :  { %v526_v49 = vpop.eup %525 }
 0x11d   :  { %v528_v50 = vpop.eup %527  ;;  %381 = vmatprep.mubr.bf16.mxu1 %v526_v49 }
 0x11e   :  { %382 = vmatmul.mubr.bf16.vlgmr.msra.gmra.mxu1 %v528_v50 }
 0x1de   :  { %v469_v51 = vpop.f32.mrf.mxu1 }
 0x1e0   :  { %v470_v52 = vpop.f32.mrf.mxu1 }
 0x1e1   :  { %v471_v53 = vadd.f32 %v470_v52, %v469_v51 }
 0x1e2   :  { %v472_v54 = vpop.f32.mrf.mxu1 }
 0x1e3   :  { %v402_v57 = vadd.f32 %v471_v53, %v452_v55 }
 0x1e4   :  { %v473_v56 = vpop.f32.mrf.mxu1 }
 0x1e5   :  { %403 = vst [vmem:[#allocation8] sm:$0xff] %v402_v57 }
 0x1e6   :  { %600 = shalt.err (!%p597_p5)
}
 0x1e7   :  { %413 = dma.vmem_to_hbm [thread:$0]  %s411_s13, 128, %s677_s5, [#allocation4]  }
 0x1e8   :  { %613 = dma.done.wait [#allocation4], 128  }
 0x1e9   :  { %614 = vsyncadd [#allocation4], 4294967168 }
 0x1ea   :  { %417 = vsyncpa [#allocation3], 1 }
 0x1eb   :  { %418 = vsyncpa [#allocation6], 1 }
 0x1ec   :  { %419 = vsyncpa [#allocation4], 1 }

</bundles_post_ra>
